<compile_context>
chip_gen: v7x
topology: tpu7x:2x2x1
jax: 0.10.0
libtpu: 0.0.40
codegen_flags: <defaults>
</compile_context>

<pallas_src>
import jax
import jax.numpy as jnp
from jax import lax
from jax.experimental import pallas as pl
from jax.experimental.pallas import tpu as pltpu

D = 25            # embedding dim (fixed by conv kernel width)
C = 4             # num classes
Co = 100          # conv output channels
KMAX = 5          # widest conv kernel
KD = KMAX * D     # 125 (im2col row width before padding)
KD_PAD = 128      # lane-dense im2col width (col 125 = bias lane, 126/127 zero)
CO_PAD = 128      # per-conv channel block (lane-dense)
FEAT_PAD = 3 * CO_PAD   # 384 fused conv output channels
C_PAD = 128       # lane-dense logits block


def _round_up(a, b):
    return (a + b - 1) // b * b


def _make_kernel(TB, L_pad):
    """Kernel closure over static tile sizes."""
    def kernel(x_ref, wc_ref, mask_ref, wf_ref, bf_ref, o_ref):
        # ---- fused conv (all 3 kernel heights) as one bf16 MXU matmul ----
        # x_ref: (TB, L_pad, 128) bf16 im2col windows; merge batch*pos -> M dim.
        # Bias is folded into row 125 of wc (the ones-lane of x), so no add here.
        xc = x_ref[...].reshape(TB * L_pad, KD_PAD)
        s = jnp.dot(xc, wc_ref[...], preferred_element_type=jnp.float32)
        s = jnp.maximum(s, 0.0).reshape(TB, L_pad, FEAT_PAD)          # ReLU (f32)

        # ---- mask invalid window positions (precomputed 0/1 mask, 1 VPU pass) ----
        # Safe post-ReLU: values >= 0, so zeroing invalid positions can't win the max.
        s = s * mask_ref[...]                                         # (L_pad,384) bcast

        # ---- max_pool1d over full sequence ----
        feat = jnp.max(s, axis=1)                                     # (TB, 384) f32

        # ---- final Linear into a lane-dense (TB, 128) block ----
        logits = jnp.dot(feat.astype(jnp.bfloat16), wf_ref[...],
                         preferred_element_type=jnp.float32) + bf_ref[...]
        o_ref[...] = logits.astype(o_ref.dtype)
    return kernel


def _pack_params(params):
    """Pack conv/fc weights into zero-padded, lane-dense fused matrices (bf16)."""
    w3, b3, w4, b4, w5, b5, wf, bf = params
    w_conv = jnp.zeros((KD_PAD, FEAT_PAD), jnp.float32)
    wf_p = jnp.zeros((FEAT_PAD, C_PAD), jnp.float32)
    bf_p = jnp.zeros((1, C_PAD), jnp.float32)
    for i, (K, w, b) in enumerate(((3, w3, b3), (4, w4, b4), (5, w5, b5))):
        w_conv = w_conv.at[:K * D, i * CO_PAD:i * CO_PAD + Co].set(w)
        # Fold conv bias into the ones-lane (row KD = 125) of the fused weight.
        w_conv = w_conv.at[KD, i * CO_PAD:i * CO_PAD + Co].set(b.reshape(-1))
        wf_p = wf_p.at[i * CO_PAD:i * CO_PAD + Co, :C].set(wf[i * Co:(i + 1) * Co])
    bf_p = bf_p.at[:, :C].set(bf)
    return (w_conv.astype(jnp.bfloat16), wf_p.astype(jnp.bfloat16), bf_p)


def cnn_text_forward(x_sbd, params):
    """x_sbd: (S, B, D) float32, like the PyTorch module's input."""
    x = jnp.transpose(x_sbd, (1, 0, 2)).astype(jnp.float32)   # (B, S, D)
    B, S, _ = x.shape
    assert S >= KMAX, "sequence length must be >= 5 (largest conv kernel)"

    L3, L4, L5 = S - 2, S - 3, S - 4          # valid conv output lengths
    L_pad = max(16, _round_up(L3, 16))        # bf16 sublane-aligned window count

    # Batch tile: multiple of 8, capped so TB*L_pad (conv matmul M) stays ~<=4096.
    tb_cap = max(8, (4096 // L_pad) // 8 * 8)
    TB = min(max(8, _round_up(B, 8)), tb_cap)
    B_pad = _round_up(B, TB)

    # ---- wrapper-side layout plumbing: im2col + lane-dense zero padding ----
    x_p = jnp.pad(x, ((0, B_pad - B), (0, (L_pad + KMAX - 1) - S), (0, 0)))
    cols = jnp.stack([x_p[:, k:k + L_pad, :] for k in range(KMAX)], axis=2)
    cols = cols.reshape(B_pad, L_pad, KD)
    cols = jnp.pad(cols, ((0, 0), (0, 0), (0, KD_PAD - KD)))   # (B_pad, L_pad, 128)
    cols = cols.at[:, :, KD].set(1.0)                          # ones-lane for folded bias
    cols = cols.astype(jnp.bfloat16)

    # Precomputed 0/1 position mask: (L_pad, FEAT_PAD) f32, one multiply in-kernel.
    pos = jnp.arange(L_pad, dtype=jnp.int32)[:, None]
    limits = jnp.concatenate([
        jnp.full((CO_PAD,), L3, jnp.int32),
        jnp.full((CO_PAD,), L4, jnp.int32),
        jnp.full((CO_PAD,), L5, jnp.int32)])[None, :]
    mask = (pos < limits).astype(jnp.float32)                  # (L_pad, 384)

    w_conv, wf_p, bf_p = _pack_params(params)
    kernel = _make_kernel(TB, L_pad)

    # Explicit VMEM budget (double-buffered inputs/outputs + f32 activation headroom).
    est = 2 * (TB * L_pad * KD_PAD * 2          # cols (bf16)
               + KD_PAD * FEAT_PAD * 2          # w_conv (bf16)
               + L_pad * FEAT_PAD * 4           # mask (f32)
               + FEAT_PAD * C_PAD * 2           # wf (bf16)
               + C_PAD * 4                      # bf (f32)
               + TB * C_PAD * 4)                # out (f32)
    est += 4 * TB * L_pad * FEAT_PAD * 4        # in-kernel f32 activation copies
    vmem_limit = int(min(max(est, 32 * 1024 * 1024), 64 * 1024 * 1024))

    out = pl.pallas_call(
        kernel,
        out_shape=jax.ShapeDtypeStruct((B_pad, C_PAD), jnp.float32),
        grid_spec=pltpu.PrefetchScalarGridSpec(
            num_scalar_prefetch=0,
            grid=(B_pad // TB,),
            in_specs=[
                pl.BlockSpec((TB, L_pad, KD_PAD), lambda i: (i, 0, 0)),
                pl.BlockSpec((KD_PAD, FEAT_PAD), lambda i: (0, 0)),
                pl.BlockSpec((L_pad, FEAT_PAD), lambda i: (0, 0)),
                pl.BlockSpec((FEAT_PAD, C_PAD), lambda i: (0, 0)),
                pl.BlockSpec((1, C_PAD), lambda i: (0, 0)),
            ],
            out_specs=pl.BlockSpec((TB, C_PAD), lambda i: (i, 0)),
        ),
        compiler_params=pltpu.CompilerParams(
            dimension_semantics=("parallel",),   # shard batch tiles across TCs on v7x
            vmem_limit_bytes=vmem_limit),
    )(cols, w_conv, mask, wf_p, bf_p)

    return out[:B, :C]


def reference_forward(x_sbd, params):
    """Pure-JAX f32 reference (im2col) matching the PyTorch semantics."""
    x = jnp.transpose(x_sbd, (1, 0, 2))   # (B, S, D)
    w3, b3, w4, b4, w5, b5, wf, bf = params
    feats = []
    for K, w, b in ((3, w3, b3), (4, w4, b4), (5, w5, b5)):
        L = x.shape[1] - K + 1
        cols = jnp.stack([x[:, k:k + L, :] for k in range(K)], axis=2)   # (B, L, K, D)
        cols = cols.reshape(x.shape[0], L, K * D)
        s = jnp.maximum(cols @ w + b, 0.0)                               # (B, L, Co)
        feats.append(jnp.max(s, axis=1))                                 # (B, Co)
    feat = jnp.concatenate(feats, axis=1)                                # (B, 300)
    return feat @ wf + bf


def init_params(key):
    ks = jax.random.split(key, 8)
    scale = 0.1
    # Conv weights stored flattened as (K*D, Co): row index = k*D + d  (matches
    # PyTorch Conv2d weight (Co, 1, K, D) flattened over (k, d) and transposed).
    w3 = scale * jax.random.normal(ks[0], (3 * D, Co), jnp.float32)
    b3 = scale * jax.random.normal(ks[1], (1, Co), jnp.float32)
    w4 = scale * jax.random.normal(ks[2], (4 * D, Co), jnp.float32)
    b4 = scale * jax.random.normal(ks[3], (1, Co), jnp.float32)
    w5 = scale * jax.random.normal(ks[4], (5 * D, Co), jnp.float32)
    b5 = scale * jax.random.normal(ks[5], (1, Co), jnp.float32)
    wf = scale * jax.random.normal(ks[6], (3 * Co, C), jnp.float32)   # Linear(300, 4), transposed
    bf = scale * jax.random.normal(ks[7], (1, C), jnp.float32)
    return (w3, b3, w4, b4, w5, b5, wf, bf)


if __name__ == "__main__":
    key = jax.random.PRNGKey(0)
    k_x, k_p = jax.random.split(key)

    S, B = 16, 2                       # seq_len=16, batch=2, embed D=25 (fixed)
    x = jax.random.normal(k_x, (S, B, D), jnp.float32)
    params = init_params(k_p)

    out = jax.block_until_ready(cnn_text_forward(x, params))
    ref = reference_forward(x, params)

    assert out.shape == (B, C), out.shape
    # bf16 operands in the kernel vs f32 reference -> loosened tolerance.
    assert jnp.allclose(out, ref, atol=5e-2, rtol=5e-2), (out, ref)
    print("KERNEL_OK")
</pallas_src>

<mosaic_0001>
module attributes {stable_mosaic.version = 11 : i64} {
  func.func @kernel(%arg0: i32, %arg1: memref<8x16x128xbf16, #tpu.memory_space<vmem>>, %arg2: memref<128x384xbf16, #tpu.memory_space<vmem>>, %arg3: memref<16x384xf32, #tpu.memory_space<vmem>>, %arg4: memref<384x128xbf16, #tpu.memory_space<vmem>>, %arg5: memref<1x128xf32, #tpu.memory_space<vmem>>, %arg6: memref<8x128xf32, #tpu.memory_space<vmem>>) attributes {dimension_semantics = [#tpu.dimension_semantics<parallel>], iteration_bounds = array<i64: 1>, scalar_prefetch = 0 : i64, scratch_operands = 0 : i64, tpu.core_type = #tpu.core_type<tc>, window_params = [{transform_indices = @transform_0, window_bounds = array<i64: 8, 16, 128>}, {pipeline_mode = #tpu.pipeline_mode<synchronous>, transform_indices = @transform_1, window_bounds = array<i64: 128, 384>}, {pipeline_mode = #tpu.pipeline_mode<synchronous>, transform_indices = @transform_2, window_bounds = array<i64: 16, 384>}, {pipeline_mode = #tpu.pipeline_mode<synchronous>, transform_indices = @transform_3, window_bounds = array<i64: 384, 128>}, {pipeline_mode = #tpu.pipeline_mode<synchronous>, transform_indices = @transform_4, window_bounds = array<i64: 1, 128>}, {transform_indices = @transform_5, window_bounds = array<i64: 8, 128>}]} {
    %c0 = arith.constant 0 : index
    %c0_0 = arith.constant 0 : index
    %c0_1 = arith.constant 0 : index
    %0 = vector.load %arg1[%c0, %c0_0, %c0_1] : memref<8x16x128xbf16, #tpu.memory_space<vmem>>, vector<8x16x128xbf16>
    %1 = vector.shape_cast %0 : vector<8x16x128xbf16> to vector<128x128xbf16>
    %c0_2 = arith.constant 0 : index
    %c0_3 = arith.constant 0 : index
    %2 = vector.load %arg2[%c0_2, %c0_3] : memref<128x384xbf16, #tpu.memory_space<vmem>>, vector<128x384xbf16>
    %cst = arith.constant dense<0.000000e+00> : vector<128x384xf32>
    %3 = tpu.matmul %1, %2, %cst {dimension_numbers = #tpu.dot_dimension_numbers<[1], [0], [0], [1], [0, 0, 1, 1], [], []>} : vector<128x128xbf16>, vector<128x384xbf16>, vector<128x384xf32> -> vector<128x384xf32>
    %cst_4 = arith.constant 0.000000e+00 : f32
    %4 = vector.broadcast %cst_4 : f32 to vector<128x384xf32>
    %5 = arith.maximumf %3, %4 : vector<128x384xf32>
    %6 = vector.shape_cast %5 : vector<128x384xf32> to vector<8x16x384xf32>
    %c0_5 = arith.constant 0 : index
    %c0_6 = arith.constant 0 : index
    %7 = vector.load %arg3[%c0_5, %c0_6] : memref<16x384xf32, #tpu.memory_space<vmem>>, vector<16x384xf32>
    %8 = vector.shape_cast %7 : vector<16x384xf32> to vector<1x16x384xf32>
    %9 = vector.broadcast %8 : vector<1x16x384xf32> to vector<8x16x384xf32>
    %10 = arith.mulf %6, %9 : vector<8x16x384xf32>
    %cst_7 = arith.constant dense<0xFF800000> : vector<8x384xf32>
    %11 = vector.multi_reduction <maximumf>, %10, %cst_7 [1] : vector<8x16x384xf32> to vector<8x384xf32>
    %12 = arith.truncf %11 : vector<8x384xf32> to vector<8x384xbf16>
    %c0_8 = arith.constant 0 : index
    %c0_9 = arith.constant 0 : index
    %13 = vector.load %arg4[%c0_8, %c0_9] : memref<384x128xbf16, #tpu.memory_space<vmem>>, vector<384x128xbf16>
    %cst_10 = arith.constant dense<0.000000e+00> : vector<8x128xf32>
    %14 = tpu.matmul %12, %13, %cst_10 {dimension_numbers = #tpu.dot_dimension_numbers<[1], [0], [0], [1], [0, 0, 1, 1], [], []>} : vector<8x384xbf16>, vector<384x128xbf16>, vector<8x128xf32> -> vector<8x128xf32>
    %c0_11 = arith.constant 0 : index
    %c0_12 = arith.constant 0 : index
    %15 = vector.load %arg5[%c0_11, %c0_12] : memref<1x128xf32, #tpu.memory_space<vmem>>, vector<1x128xf32>
    %16 = vector.broadcast %15 : vector<1x128xf32> to vector<8x128xf32>
    %17 = arith.addf %14, %16 : vector<8x128xf32>
    %c0_13 = arith.constant 0 : index
    %c0_14 = arith.constant 0 : index
    %18 = vector.load %arg6[%c0_13, %c0_14] : memref<8x128xf32, #tpu.memory_space<vmem>>, vector<8x128xf32>
    tpu.vector_store %arg6[%c0_13, %c0_14], %17 {strides = array<i32>} : memref<8x128xf32, #tpu.memory_space<vmem>>, vector<8x128xf32>,
    return
  }
  func.func @transform_0(%arg0: i32) -> (i32, i32, i32) {
    %c0_i32 = arith.constant 0 : i32
    %c0_i32_0 = arith.constant 0 : i32
    %c0_i32_1 = arith.constant 0 : i32
    return %arg0, %c0_i32, %c0_i32_0 : i32, i32, i32
  }
  func.func @transform_1(%arg0: i32) -> (i32, i32) {
    %c0_i32 = arith.constant 0 : i32
    %c0_i32_0 = arith.constant 0 : i32
    %c0_i32_1 = arith.constant 0 : i32
    return %c0_i32, %c0_i32_0 : i32, i32
  }
  func.func @transform_2(%arg0: i32) -> (i32, i32) {
    %c0_i32 = arith.constant 0 : i32
    %c0_i32_0 = arith.constant 0 : i32
    %c0_i32_1 = arith.constant 0 : i32
    return %c0_i32, %c0_i32_0 : i32, i32
  }
  func.func @transform_3(%arg0: i32) -> (i32, i32) {
    %c0_i32 = arith.constant 0 : i32
    %c0_i32_0 = arith.constant 0 : i32
    %c0_i32_1 = arith.constant 0 : i32
    return %c0_i32, %c0_i32_0 : i32, i32
  }
  func.func @transform_4(%arg0: i32) -> (i32, i32) {
    %c0_i32 = arith.constant 0 : i32
    %c0_i32_0 = arith.constant 0 : i32
    %c0_i32_1 = arith.constant 0 : i32
    return %c0_i32, %c0_i32_0 : i32, i32
  }
  func.func @transform_5(%arg0: i32) -> (i32, i32) {
    %c0_i32 = arith.constant 0 : i32
    %c0_i32_0 = arith.constant 0 : i32
    return %arg0, %c0_i32 : i32, i32
  }
}

</mosaic_0001>

<bundles_post_ra>
// kernel: tpu_custom_call.1
= control target key start
LH: loop header
LB: loop body
LE: loop exit
PB: predicated region body
PF: predicated region fallthrough
CT: control target
= control target key end

     0   :  { %10 = vsyncpa [#allocation3], 0  ;;  %s1846_s0 = inlined_call_operand.hbm [shape: bf16[8,16,128], index: 0, kind: input, shape index: {}]   ;;  %s1847_s1 = inlined_call_operand.hbm [shape: bf16[128,384], index: 1, kind: input, shape index: {}]   ;;  %s1848_s2 = inlined_call_operand.hbm [shape: f32[16,384], index: 2, kind: input, shape index: {}]   ;;  %s1849_s3 = inlined_call_operand.hbm [shape: bf16[384,128], index: 3, kind: input, shape index: {}]   ;;  %s1850_s4 = inlined_call_operand.vmem [shape: f32[1,128], index: 4, kind: input, shape index: {}]   ;;  %s1851_s5 = inlined_call_operand.hbm [shape: f32[8,128], index: 5, kind: output, shape index: {}]  }
   0x1   :  { %11 = vsyncpa [#allocation6], 0 }
   0x2   :  { %12 = vsyncpa [#allocation9], 0 }
   0x3   :  { %13 = vsyncpa [#allocation4], 0  ;;  %s1536_s18 = smov [#allocation5]   ;;  %s1418_s22 = scalar_lea.hbm %s1847_s1, 3072 }
   0x4   :  { %s31_s19 = sshll.u32 %s1536_s18, 4  ;;  %p1419_p0 = scmp.ne.s32.totalorder %s1847_s1, %s1418_s22  ;;  %s32_s19 = int_to_ptr.vmem [resolvable:$true] %s31_s19 }
   0x5   :  { %p1422_p1 = scmp.lt.u32.totalorder %s1418_s22, %s1847_s1 }
   0x7   :  { %p1424_p2 = pnand %p1422_p1, %p1419_p0 }
   0x9   :  { %1427 = shalt.err (!%p1424_p2)
}
   0xa   :  { %s1428_s27 = scalar_lea.vmem %s32_s19, 3072  ;;  %p1433_p4 = scmp.lt.s32.totalorder %s32_s19, %s32_s19 }
   0xb   :  { %p1429_p3 = scmp.ne.s32.totalorder %s32_s19, %s1428_s27  ;;  %p1434_p5 = scmp.lt.s32.totalorder %s1428_s27, %s1428_s27 }
   0xd   :  { %p1435_p6 = por %p1434_p5, %p1433_p4 }
   0xf   :  { %p1436_p7 = pnand %p1435_p6, %p1429_p3 }
  0x11   :  { %1439 = shalt.err (!%p1436_p7)
}
  0x12   :  { %s1537_s28 = smov 192   ;;  %s1538_s29 = smov 12  }
  0x13   :  { %37 = dma.hbm_to_vmem [thread:$0]  %s1847_s1, 3072, %s32_s19, [#allocation6], %s1537_s28, %s1537_s28, %s1538_s29  }
  0x14   :  { %s1539_s7 = smov [#allocation2]   ;;  %s1440_s11 = scalar_lea.hbm %s1846_s0, 1024 }
  0x15   :  { %s19_s8 = sshll.u32 %s1539_s7, 4  ;;  %p1441_p8 = scmp.ne.s32.totalorder %s1846_s0, %s1440_s11  ;;  %s20_s8 = int_to_ptr.vmem [resolvable:$true] %s19_s8 }
  0x16   :  { %p1444_p9 = scmp.lt.u32.totalorder %s1440_s11, %s1846_s0 }
  0x18   :  { %p1446_p10 = pnand %p1444_p9, %p1441_p8 }
  0x1a   :  { %1449 = shalt.err (!%p1446_p10)
}
  0x1b   :  { %s1450_s16 = scalar_lea.vmem %s20_s8, 1024  ;;  %p1455_p12 = scmp.lt.s32.totalorder %s20_s8, %s20_s8 }
  0x1c   :  { %p1451_p11 = scmp.ne.s32.totalorder %s20_s8, %s1450_s16  ;;  %p1456_p13 = scmp.lt.s32.totalorder %s1450_s16, %s1450_s16 }
  0x1e   :  { %p1457_p0 = por %p1456_p13, %p1455_p12 }
  0x20   :  { %p1458_p1 = pnand %p1457_p0, %p1451_p11 }
  0x22   :  { %1461 = shalt.err (!%p1458_p1)
}
  0x23   :  { %s1540_s1 = smov 64   ;;  %s1541_s17 = smov 4  }
  0x24   :  { %25 = dma.hbm_to_vmem [thread:$0]  %s1846_s0, 1024, %s20_s8, [#allocation3], %s1540_s1, %s1540_s1, %s1541_s17  }
  0x25   :  { %s1542_s20 = smov [#allocation7]   ;;  %s1462_s24 = scalar_lea.hbm %s1848_s2, 768 }
  0x26   :  { %s43_s21 = sshll.u32 %s1542_s20, 4  ;;  %p1463_p2 = scmp.ne.s32.totalorder %s1848_s2, %s1462_s24  ;;  %s44_s21 = int_to_ptr.vmem [resolvable:$true] %s43_s21 }
  0x27   :  { %p1466_p3 = scmp.lt.u32.totalorder %s1462_s24, %s1848_s2 }
  0x29   :  { %p1468_p4 = pnand %p1466_p3, %p1463_p2 }
  0x2b   :  { %1471 = shalt.err (!%p1468_p4)
}
  0x2c   :  { %s1472_s29 = scalar_lea.vmem %s44_s21, 768  ;;  %p1477_p6 = scmp.lt.s32.totalorder %s44_s21, %s44_s21 }
  0x2d   :  { %p1473_p5 = scmp.ne.s32.totalorder %s44_s21, %s1472_s29  ;;  %p1478_p7 = scmp.lt.s32.totalorder %s1472_s29, %s1472_s29 }
  0x2f   :  { %p1479_p8 = por %p1478_p7, %p1477_p6 }
  0x31   :  { %p1480_p9 = pnand %p1479_p8, %p1473_p5 }
  0x33   :  { %1483 = shalt.err (!%p1480_p9)
}
  0x34   :  { %s1543_s0 = smov 384   ;;  %s1544_s30 = smov 24  }
  0x35   :  { %49 = dma.hbm_to_vmem [thread:$0]  %s1848_s2, 768, %s44_s21, [#allocation6], %s1543_s0, %s1543_s0, %s1544_s30  }
  0x36   :  { %s1545_s8 = smov [#allocation8]   ;;  %s1484_s12 = scalar_lea.hbm %s1849_s3, 3072 }
  0x37   :  { %s55_s9 = sshll.u32 %s1545_s8, 4  ;;  %p1485_p10 = scmp.ne.s32.totalorder %s1849_s3, %s1484_s12  ;;  %s56_s9 = int_to_ptr.vmem [resolvable:$true] %s55_s9 }
  0x38   :  { %p1488_p11 = scmp.lt.u32.totalorder %s1484_s12, %s1849_s3 }
  0x3a   :  { %p1490_p12 = pnand %p1488_p11, %p1485_p10 }
  0x3c   :  { %1493 = shalt.err (!%p1490_p12)
}
  0x3d   :  { %s1494_s18 = scalar_lea.vmem %s56_s9, 3072  ;;  %p1499_p0 = scmp.lt.s32.totalorder %s56_s9, %s56_s9 }
  0x3e   :  { %p1495_p13 = scmp.ne.s32.totalorder %s56_s9, %s1494_s18  ;;  %p1500_p1 = scmp.lt.s32.totalorder %s1494_s18, %s1494_s18 }
  0x40   :  { %p1501_p2 = por %p1500_p1, %p1499_p0 }
  0x42   :  { %p1502_p3 = pnand %p1501_p2, %p1495_p13 }
  0x44   :  { %1505 = shalt.err (!%p1502_p3)
}
  0x45   :  { %61 = dma.hbm_to_vmem [thread:$0]  %s1849_s3, 3072, %s56_s9, [#allocation9], %s1540_s1, %s1540_s1, %s1541_s17  }
  0x46   :  { %1528 = dma.done.wait [#allocation3], 1024  }
  0x47   :  { %1529 = vsyncadd [#allocation3], 4294966272 }
  0x48   :  { %1530 = dma.done.wait [#allocation6], 3840  }
  0x49   :  { %1531 = vsyncadd [#allocation6], 4294963456 }
  0x4a   :  { %1532 = dma.done.wait [#allocation9], 3072  }
  0x4b   :  { %1533 = vsyncadd [#allocation9], 4294964224  ;;  %v1546_v0 = vmov 0   ;;  %v1354_v1 = vld [vmem:[#allocation5 + $0x4] ss:$12 sps:$4 sm:$0xff]   ;;  %v1387_v26 = vld [vmem:[#allocation2 + $0x8] sm:$0xff]  }
  0x4c   :  { %333 = vmatprep.mubr.bf16.mxu0 %v1546_v0  ;;  %v1356_v2 = vld [vmem:[#allocation5] ss:$12 sps:$4 sm:$0xff]   ;;  %301 = vmatprep.subr.bf16.mxu0 %v1354_v1  ;;  %v1357_v3 = vld [vmem:[#allocation5 + $0x1c] ss:$12 sps:$4 sm:$0xff]   ;;  %v1359_v4 = vld [vmem:[#allocation5 + $0x18] ss:$12 sps:$4 sm:$0xff]  }
  0x4d   :  { %302 = vmatpush1.bf16.msra.mxu0 %v1356_v2  ;;  %v1360_v5 = vld [vmem:[#allocation5 + $0x8] ss:$12 sps:$4 sm:$0xff]   ;;  %v1364_v7 = vld [vmem:[#allocation5 + $0x20] ss:$12 sps:$4 sm:$0xff]   ;;  %v1363_v8 = vld [vmem:[#allocation5 + $0x30] ss:$12 sps:$4 sm:$0xff]  }
  0x4e   :  { %303 = vmatprep.subr.bf16.mxu0 %v1357_v3  ;;  %v1361_v6 = vld [vmem:[#allocation5 + $0x34] ss:$12 sps:$4 sm:$0xff]   ;;  %1288 = vmatprep.subr.bf16.mxu1 %v1360_v5  ;;  %v1365_v9 = vld [vmem:[#allocation5 + $0x4c] ss:$12 sps:$4 sm:$0xff]   ;;  %v1372_v12 = vld [vmem:[#allocation5 + $0x50] ss:$12 sps:$4 sm:$0xff]  }
  0x4f   :  { %1289 = vmatpush3.bf16.msra.mxu1 %v1360_v5  ;;  %v1368_v10 = vld [vmem:[#allocation5 + $0x38] ss:$12 sps:$4 sm:$0xff]   ;;  %v1367_v11 = vld [vmem:[#allocation5 + $0x48] ss:$12 sps:$4 sm:$0xff]   ;;  %v1371_v14 = vld [vmem:[#allocation5 + $0x60] ss:$12 sps:$4 sm:$0xff]  }
  0x50   :  { %1290 = vmatprep.subr.bf16.mxu1 %v1364_v7  ;;  %v1369_v13 = vld [vmem:[#allocation5 + $0x64] ss:$12 sps:$4 sm:$0xff]   ;;  %v1376_v15 = vld [vmem:[#allocation5 + $0x68] ss:$12 sps:$4 sm:$0xff]   ;;  %v1380_v19 = vld [vmem:[#allocation5 + $0x80] ss:$12 sps:$4 sm:$0xff]  }
  0x51   :  { %304 = vmatpush1.bf16.msra.mxu0 %v1359_v4  ;;  %v1373_v16 = vld [vmem:[#allocation5 + $0x7c] ss:$12 sps:$4 sm:$0xff]   ;;  %v1375_v17 = vld [vmem:[#allocation5 + $0x78] ss:$12 sps:$4 sm:$0xff]   ;;  %v1377_v20 = vld [vmem:[#allocation5 + $0x94] ss:$12 sps:$4 sm:$0xff]  }
  0x52   :  { %305 = vmatprep.subr.bf16.mxu0 %v1361_v6  ;;  %v1385_v18 = vld [vmem:[#allocation2] sm:$0xff]   ;;  %v1379_v21 = vld [vmem:[#allocation5 + $0x90] ss:$12 sps:$4 sm:$0xff]   ;;  %v1381_v23 = vld [vmem:[#allocation5 + $0xac] ss:$12 sps:$4 sm:$0xff]   ;;  %v1547_v33 = vmov 0.0  }
  0x53   :  { %1291 = vmatpush3.bf16.msra.mxu1 %v1364_v7  ;;  %1304 = vmatprep.mubr.bf16.mxu1 %v1385_v18  ;;  %v1384_v22 = vld [vmem:[#allocation5 + $0x98] ss:$12 sps:$4 sm:$0xff]   ;;  %v1383_v24 = vld [vmem:[#allocation5 + $0xa8] ss:$12 sps:$4 sm:$0xff]   ;;  %v1386_v25 = vld [vmem:[#allocation5 + $0xb0] ss:$12 sps:$4 sm:$0xff]  }
  0x54   :  { %1292 = vmatprep.subr.bf16.mxu1 %v1368_v10  ;;  %v1388_v27 = vld [vmem:[#allocation2 + $0x10] sm:$0xff]   ;;  %v1389_v28 = vld [vmem:[#allocation2 + $0x18] sm:$0xff]   ;;  %v1390_v29 = vld [vmem:[#allocation2 + $0x20] sm:$0xff]   ;;  %vm1548_vm0 = vmmov 0   ;;  %vm908_vm1 = vcmask 1041409   ;;  %vm910_vm2 = vcmask 1042434  }
  0x55   :  { %306 = vmatpush1.bf16.msra.mxu0 %v1363_v8  ;;  %v1391_v30 = vld [vmem:[#allocation2 + $0x28] sm:$0xff]   ;;  %v1392_v31 = vld [vmem:[#allocation2 + $0x30] sm:$0xff]   ;;  %v1393_v32 = vld [vmem:[#allocation2 + $0x38] sm:$0xff]   ;;  %vm912_vm3 = vcmask 1043459   ;;  %vm914_vm4 = vcmask 1044484   ;;  %vm916_vm5 = vcmask 1045509  }
  0x56   :  { %307 = vmatprep.subr.bf16.mxu0 %v1365_v9  ;;  %v1394_v34 = vld [vmem:[#allocation8 + $0x80] sm:$0xff]   ;;  %v1395_v35 = vld [vmem:[#allocation8 + $0x88] sm:$0xff]   ;;  %v1396_v36 = vld [vmem:[#allocation8 + $0x90] sm:$0xff]   ;;  %vm918_vm6 = vcmask 1046534   ;;  %vm920_vm7 = vcmask 1047559   ;;  %s1549_s17 = smov [#allocation10]  }
  0x57   :  { %1293 = vmatpush3.bf16.msra.mxu1 %v1368_v10  ;;  %v1397_v37 = vld [vmem:[#allocation8 + $0x98] sm:$0xff]   ;;  %v1398_v38 = vld [vmem:[#allocation8 + $0xa0] sm:$0xff]   ;;  %v1399_v39 = vld [vmem:[#allocation8 + $0xa8] sm:$0xff]   ;;  %s1173_s20 = sshll.u32 %s1549_s17, 4  ;;  %s1174_s20 = int_to_ptr.vmem [resolvable:$true] %s1173_s20 }
  0x58   :  { %1294 = vmatprep.subr.bf16.mxu1 %v1372_v12  ;;  %v1401_v40 = vld [vmem:[#allocation8 + $0xb0] sm:$0xff]   ;;  %v1400_v41 = vld [vmem:[#allocation8 + $0x40] sm:$0xff]   ;;  %v1404_v43 = vld [vmem:[#allocation8 + $0xb8] sm:$0xff]   ;;  %s1506_s21 = scalar_lea.vmem %s1174_s20, 128  ;;  %p1511_p5 = scmp.lt.s32.totalorder %s1174_s20, %s1174_s20 }
  0x59   :  { %308 = vmatpush1.bf16.msra.mxu0 %v1367_v11  ;;  %v1402_v42 = vld [vmem:[#allocation8] sm:$0xff]   ;;  %v1403_v44 = vld [vmem:[#allocation8 + $0x48] sm:$0xff]   ;;  %v1406_v46 = vld [vmem:[#allocation8 + $0x50] sm:$0xff]   ;;  %p1507_p4 = scmp.ne.s32.totalorder %s1174_s20, %s1506_s21  ;;  %p1512_p6 = scmp.lt.s32.totalorder %s1506_s21, %s1506_s21 }
  0x5a   :  { %309 = vmatprep.subr.bf16.mxu0 %v1369_v13  ;;  %v1405_v45 = vld [vmem:[#allocation8 + $0x8] sm:$0xff]   ;;  %v1407_v47 = vld [vmem:[#allocation8 + $0x10] sm:$0xff]   ;;  %v1408_v48 = vld [vmem:[#allocation8 + $0x58] sm:$0xff]  }
  0x5b   :  { %1295 = vmatpush3.bf16.msra.mxu1 %v1372_v12  ;;  %v1409_v49 = vld [vmem:[#allocation8 + $0x18] sm:$0xff]   ;;  %v1410_v50 = vld [vmem:[#allocation8 + $0x60] sm:$0xff]   ;;  %v1412_v52 = vld [vmem:[#allocation8 + $0x68] sm:$0xff]   ;;  %p1513_p7 = por %p1512_p6, %p1511_p5 }
  0x5c   :  { %1296 = vmatprep.subr.bf16.mxu1 %v1376_v15  ;;  %v1411_v51 = vld [vmem:[#allocation8 + $0x20] sm:$0xff]   ;;  %v1413_v53 = vld [vmem:[#allocation8 + $0x28] sm:$0xff]   ;;  %v1414_v54 = vld [vmem:[#allocation8 + $0x70] sm:$0xff]  }
  0x5d   :  { %310 = vmatpush1.bf16.msra.mxu0 %v1371_v14  ;;  %v1415_v55 = vld [vmem:[#allocation8 + $0x30] sm:$0xff]   ;;  %v1416_v56 = vld [vmem:[#allocation8 + $0x78] sm:$0xff]   ;;  %v1650_v6 = vld [vmem:[#allocation7 + $0x10] sm:$0xff]  ;;  %p1514_p8 = pnand %p1513_p7, %p1507_p4 }
  0x5e   :  { %311 = vmatprep.subr.bf16.mxu0 %v1373_v16  ;;  %v1417_v57 = vld [vmem:[#allocation8 + $0x38] sm:$0xff]   ;;  %v1642_v61 = vld [vmem:[#allocation7] sm:$0xff] }
  0x5f   :  { %1297 = vmatpush3.bf16.msra.mxu1 %v1376_v15  ;;  %v1646_v1 = vld [vmem:[#allocation7 + $0x8] sm:$0xff]  ;;  %v1648_v4 = vld [vmem:[#allocation7 + $0x20] sm:$0xff] }
  0x60   :  { %1298 = vmatprep.subr.bf16.mxu1 %v1380_v19  ;;  %v1654_v14 = vld [vmem:[#allocation7 + $0x28] sm:$0xff] }
  0x61   :  { %312 = vmatpush1.bf16.msra.mxu0 %v1375_v17 }
  0x62   :  { %313 = vmatprep.subr.bf16.mxu0 %v1377_v20 }
  0x63   :  { %1299 = vmatpush3.bf16.msra.mxu1 %v1380_v19 }
  0x64   :  { %1300 = vmatprep.subr.bf16.mxu1 %v1384_v22 }
  0x65   :  { %314 = vmatpush1.bf16.msra.mxu0 %v1379_v21 }
  0x66   :  { %315 = vmatprep.subr.bf16.mxu0 %v1381_v23 }
  0x67   :  { %1301 = vmatpush3.bf16.msra.mxu1 %v1384_v22 }
  0x68   :  { %1302 = vmatprep.subr.bf16.mxu1 %v1386_v25 }
  0x69   :  { %316 = vmatpush1.bf16.msra.mxu0 %v1383_v24 }
  0x6a   :  { %1320 = vmatprep.subr.bf16.mxu0 %v1547_v33 }
  0x6b   :  { %1303 = vmatpush3.bf16.msra.mxu1 %v1386_v25 }
  0x6c   :  { %334 = vmatmul.mubr.bf16.vlgmr.msra.gmra.mrb[0].mxu0 %v1385_v18  ;;  %1257 = vmatprep.subr.bf16.mxu1 %v1400_v41 }
  0x6d   :  { %343 = vmatprep.mubr.bf16.mxu0 %v1546_v0  ;;  %1321 = vmatpush3.bf16.msra.mxu0 %v1394_v34 }
  0x6e   :  { %1305 = vmatmul.mubr.bf16.vlgmr.msra.gmra.mrb[0].mxu1 %v1387_v26  ;;  %1322 = vmatprep.subr.bf16.mxu0 %v1547_v33 }
  0x6f   :  { %1308 = vmatprep.mubr.bf16.mxu1 %v1388_v27  ;;  %1258 = vmatpush3.bf16.msra.mxu1 %v1402_v42 }
  0x70   :  { %1259 = vmatprep.subr.bf16.mxu1 %v1403_v44 }
  0x71   :  { %1323 = vmatpush3.bf16.msra.mxu0 %v1395_v35 }
  0x72   :  { %1324 = vmatprep.subr.bf16.mxu0 %v1547_v33 }
  0x73   :  { %1260 = vmatpush3.bf16.msra.mxu1 %v1405_v45 }
  0x74   :  { %344 = vmatmul.mubr.bf16.gmra.mrb[4].mxu0 %v1387_v26  ;;  %1261 = vmatprep.subr.bf16.mxu1 %v1406_v46 }
  0x75   :  { %353 = vmatprep.mubr.bf16.mxu0 %v1546_v0  ;;  %1325 = vmatpush3.bf16.msra.mxu0 %v1396_v36 }
  0x76   :  { %1309 = vmatmul.mubr.bf16.gmra.mrb[4].mxu1 %v1389_v28  ;;  %1326 = vmatprep.subr.bf16.mxu0 %v1547_v33 }
  0x77   :  { %1312 = vmatprep.mubr.bf16.mxu1 %v1390_v29  ;;  %1262 = vmatpush3.bf16.msra.mxu1 %v1407_v47 }
  0x78   :  { %1263 = vmatprep.subr.bf16.mxu1 %v1408_v48 }
  0x79   :  { %1327 = vmatpush3.bf16.msra.mxu0 %v1397_v37 }
  0x7a   :  { %1328 = vmatprep.subr.bf16.mxu0 %v1547_v33 }
  0x7b   :  { %1264 = vmatpush3.bf16.msra.mxu1 %v1409_v49 }
  0x7c   :  { %354 = vmatmul.mubr.bf16.gmra.mrb[8].mxu0 %v1388_v27  ;;  %1265 = vmatprep.subr.bf16.mxu1 %v1410_v50 }
  0x7d   :  { %363 = vmatprep.mubr.bf16.mxu0 %v1546_v0  ;;  %1329 = vmatpush3.bf16.msra.mxu0 %v1398_v38 }
  0x7e   :  { %1313 = vmatmul.mubr.bf16.gmra.mrb[8].mxu1 %v1391_v30  ;;  %1330 = vmatprep.subr.bf16.mxu0 %v1547_v33 }
  0x7f   :  { %1316 = vmatprep.mubr.bf16.mxu1 %v1392_v31  ;;  %1266 = vmatpush3.bf16.msra.mxu1 %v1411_v51 }
  0x80   :  { %1267 = vmatprep.subr.bf16.mxu1 %v1412_v52 }
  0x81   :  { %1331 = vmatpush3.bf16.msra.mxu0 %v1399_v39 }
  0x82   :  { %1332 = vmatprep.subr.bf16.mxu0 %v1547_v33 }
  0x83   :  { %1268 = vmatpush3.bf16.msra.mxu1 %v1413_v53 }
  0x84   :  { %364 = vmatmul.mubr.bf16.gmra.mrb[12].mxu0 %v1389_v28  ;;  %1269 = vmatprep.subr.bf16.mxu1 %v1414_v54 }
  0x85   :  { %373 = vmatprep.mubr.bf16.mxu0 %v1546_v0  ;;  %1333 = vmatpush3.bf16.msra.mxu0 %v1401_v40 }
  0x86   :  { %1317 = vmatmul.mubr.bf16.gmra.mrb[12].mxu1 %v1393_v32  ;;  %1334 = vmatprep.subr.bf16.mxu0 %v1547_v33 }
  0x87   :  { %1270 = vmatpush3.bf16.msra.mxu1 %v1415_v55 }
  0x88   :  { %1271 = vmatprep.subr.bf16.mxu1 %v1416_v56 }
  0x89   :  { %1335 = vmatpush3.bf16.msra.mxu0 %v1404_v43 }
  0x8b   :  { %1272 = vmatpush3.bf16.msra.mxu1 %v1417_v57 }
  0x8c   :  { %374 = vmatmul.mubr.bf16.gmra.mrb[16].mxu0 %v1390_v29 }
  0x8d   :  { %383 = vmatprep.mubr.bf16.mxu0 %v1546_v0 }
  0x94   :  { %384 = vmatmul.mubr.bf16.gmra.mrb[20].mxu0 %v1391_v30 }
  0x95   :  { %393 = vmatprep.mubr.bf16.mxu0 %v1546_v0 }
  0x9c   :  { %394 = vmatmul.mubr.bf16.gmra.mrb[24].mxu0 %v1392_v31 }
  0x9d   :  { %403 = vmatprep.mubr.bf16.mxu0 %v1546_v0  ;;  %v1644_v0 = vld [vmem:[#allocation7 + $0x18] sm:$0xff] }
  0xa4   :  { %404 = vmatmul.mubr.bf16.gmra.mrb[28].mxu0 %v1393_v32 }
  0xa5   :  { %1336 = vmatprep.mubr.msk.bf16.mxu0 %vm1548_vm0, %v1547_v33 }
 0x13f   :  { %v335_v58 = vpop.f32.mrb[0].mxu0 }
 0x140   :  { %v511_v59 = vmax.f32 %v335_v58, 0.0  ;;  %v337_v60 = vpop.f32.mrb[1].mxu0 }
 0x141   :  { %v512_v62 = vmax.f32 %v337_v60, 0.0  ;;  %v339_v63 = vpop.f32.mrb[2].mxu0  ;;  %v1306_v5 = vpop.f32.mrb[0].mxu1 }
 0x142   :  { %v514_v2 = vmax.f32 %v339_v63, 0.0  ;;  %v341_v3 = vpop.f32.mrb[3].mxu0  ;;  %v519_v8 = vmax.f32 %v1306_v5, 0.0  ;;  %v448_v9 = vpop.f32.mrb[1].mxu1  ;;  %v565_v10 = vmul.f32 %v1642_v61, %v511_v59 }
 0x143   :  { %v515_v7 = vmax.f32 %v341_v3, 0.0  ;;  %v513_v12 = vmax.f32 %v448_v9, 0.0  ;;  %v1307_v13 = vpop.f32.mrb[2].mxu1  ;;  %v566_v15 = vmul.f32 %v1646_v1, %v512_v62 }
 0x144   :  { %v568_v11 = vmul.f32 %v1644_v0, %v514_v2  ;;  %v573_v17 = vmul.f32 %v1650_v6, %v519_v8  ;;  %v522_v18 = vmax.f32 %v1307_v13, 0.0  ;;  %v451_v19 = vpop.f32.mrb[3].mxu1 }
 0x145   :  { %v569_v16 = vmul.f32 %v1648_v4, %v515_v7  ;;  %v567_v21 = vmul.f32 %v1650_v6, %v513_v12  ;;  %v516_v22 = vmax.f32 %v451_v19, 0.0 }
 0x146   :  { %v613_v20 = vmax.f32 %v565_v10, %v568_v11  ;;  %v576_v25 = vmul.f32 %v1654_v14, %v522_v18 }
 0x147   :  { %v620_v23 = vmax.f32 %v566_v15, %v569_v16  ;;  %v345_v24 = vpop.f32.mrb[4].mxu0  ;;  %v570_v29 = vmul.f32 %v1654_v14, %v516_v22 }
 0x148   :  { %v614_v26 = vrot.slane %v613_v20, 4  ;;  %v517_v27 = vmax.f32 %v345_v24, 0.0  ;;  %v347_v28 = vpop.f32.mrb[5].mxu0  ;;  %v648_v33 = vmax.f32 %v573_v17, %v576_v25 }
 0x149   :  { %v621_v30 = vrot.slane %v620_v23, 4  ;;  %v518_v31 = vmax.f32 %v347_v28, 0.0  ;;  %v349_v32 = vpop.f32.mrb[6].mxu0  ;;  %v627_v38 = vmax.f32 %v567_v21, %v570_v29  ;;  %v1310_v39 = vpop.f32.mrb[4].mxu1 }
 0x14a   :  { %v615_v34 = vmax.f32 %v613_v20, %v614_v26  ;;  %v571_v35 = vmul.f32 %v1642_v61, %v517_v27  ;;  %v520_v36 = vmax.f32 %v349_v32, 0.0  ;;  %v351_v37 = vpop.f32.mrb[7].mxu0  ;;  %v649_v43 = vrot.slane %v648_v33, 4  ;;  %v464_v44 = vpop.f32.mrb[5].mxu1 }
 0x14b   :  { %v622_v40 = vmax.f32 %v620_v23, %v621_v30  ;;  %v572_v41 = vmul.f32 %v1646_v1, %v518_v31  ;;  %v521_v42 = vmax.f32 %v351_v37, 0.0  ;;  %v628_v47 = vrot.slane %v627_v38, 4  ;;  %v1665_v49 = vpop.f32.mrb[6].mxu1 }
 0x14c   :  { %v616_v45 = vrot.slane %v615_v34, 2  ;;  %v574_v46 = vmul.f32 %v1644_v0, %v520_v36  ;;  %v531_v48 = vmax.f32 %v1310_v39, 0.0  ;;  %v650_v52 = vmax.f32 %v648_v33, %v649_v43  ;;  %v1668_v54 = vpop.f32.mrb[7].mxu1 }
 0x14d   :  { %v623_v50 = vrot.slane %v622_v40, 2  ;;  %v575_v51 = vmul.f32 %v1648_v4, %v521_v42  ;;  %v525_v53 = vmax.f32 %v464_v44, 0.0  ;;  %v629_v57 = vmax.f32 %v627_v38, %v628_v47 }
 0x14e   :  { %v617_v55 = vmax.f32 %v615_v34, %v616_v45  ;;  %v634_v56 = vmax.f32 %v571_v35, %v574_v46  ;;  %v1671_v58 = vmul.f32 %v1650_v6, %v531_v48  ;;  %v651_v63 = vrot.slane %v650_v52, 2 }
 0x14f   :  { %v624_v59 = vmax.f32 %v622_v40, %v623_v50  ;;  %v641_v60 = vmax.f32 %v572_v41, %v575_v51  ;;  %v355_v62 = vpop.f32.mrb[8].mxu0  ;;  %v1674_v2 = vmul.f32 %v1650_v6, %v525_v53  ;;  %v630_v9 = vrot.slane %v629_v57, 2 }
 0x150   :  { %v618_v3 = vrot.slane %v617_v55, 1  ;;  %v635_v5 = vrot.slane %v634_v56, 4  ;;  %v523_v7 = vmax.f32 %v355_v62, 0.0  ;;  %v357_v8 = vpop.f32.mrb[9].mxu0  ;;  %v652_v15 = vmax.f32 %v650_v52, %v651_v63 }
 0x151   :  { %v625_v10 = vrot.slane %v624_v59, 1  ;;  %v642_v11 = vrot.slane %v641_v60, 4  ;;  %v524_v12 = vmax.f32 %v357_v8, 0.0  ;;  %v359_v13 = vpop.f32.mrb[10].mxu0  ;;  %v1677_v21 = vpop.f32.mrb[8].mxu1  ;;  %v631_v35 = vmax.f32 %v629_v57, %v630_v9 }
 0x152   :  { %v619_v16 = vmax.f32 %v617_v55, %v618_v3  ;;  %v636_v17 = vmax.f32 %v634_v56, %v635_v5  ;;  %v577_v18 = vmul.f32 %v1642_v61, %v523_v7  ;;  %v526_v19 = vmax.f32 %v359_v13, 0.0  ;;  %v361_v20 = vpop.f32.mrb[11].mxu0  ;;  %v1680_v26 = vpop.f32.mrb[9].mxu1 }
 0x153   :  { %v626_v22 = vmax.f32 %v624_v59, %v625_v10  ;;  %v643_v23 = vmax.f32 %v641_v60, %v642_v11  ;;  %v578_v24 = vmul.f32 %v1646_v1, %v524_v12  ;;  %v527_v25 = vmax.f32 %v361_v20, 0.0  ;;  %v1683_v31 = vpop.f32.mrb[10].mxu1 }
 0x154   :  { %v781_v27 = vpack.c.bf16 %v619_v16, %v619_v16  ;;  %v637_v28 = vrot.slane %v636_v17, 2  ;;  %v580_v29 = vmul.f32 %v1644_v0, %v526_v19  ;;  %v653_v30 = vrot.slane %v652_v15, 1  ;;  %v1686_v36 = vpop.f32.mrb[11].mxu1 }
 0x155   :  { %v782_v32 = vpack.c.bf16 %v626_v22, %v626_v22  ;;  %v644_v33 = vrot.slane %v643_v23, 2  ;;  %v581_v34 = vmul.f32 %v1648_v4, %v527_v25  ;;  %v632_v44 = vrot.slane %v631_v35, 1 }
 0x156   :  { %v884_v37 = vunpack.c.l.b16 %v781_v27  ;;  %v638_v38 = vmax.f32 %v636_v17, %v637_v28  ;;  %v655_v39 = vmax.f32 %v577_v18, %v580_v29  ;;  %v654_v40 = vmax.f32 %v652_v15, %v653_v30 }
 0x157   :  { %v885_v41 = vunpack.c.l.b16 %v782_v32  ;;  %v645_v42 = vmax.f32 %v643_v23, %v644_v33  ;;  %v662_v43 = vmax.f32 %v578_v24, %v581_v34  ;;  %v365_v45 = vpop.f32.mrb[12].mxu0  ;;  %v633_v55 = vmax.f32 %v631_v35, %v632_v44 }
 0x158   :  { %v639_v46 = vrot.slane %v638_v38, 1  ;;  %v656_v47 = vrot.slane %v655_v39, 4  ;;  %v786_v48 = vpack.c.bf16 %v654_v40, %v654_v40  ;;  %v529_v50 = vmax.f32 %v365_v45, 0.0  ;;  %v367_v51 = vpop.f32.mrb[13].mxu0 }
 0x159   :  { %v646_v52 = vrot.slane %v645_v42, 1  ;;  %v663_v53 = vrot.slane %v662_v43, 4  ;;  %v534_v56 = vmax.f32 %v1665_v49, 0.0  ;;  %v369_v57 = vpop.f32.mrb[14].mxu0  ;;  %v1690_v5 = vpop.f32.mrb[12].mxu1  ;;  %v783_v9 = vpack.c.bf16 %v633_v55, %v633_v55 }
 0x15a   :  { %v640_v59 = vmax.f32 %v638_v38, %v639_v46  ;;  %v657_v60 = vmax.f32 %v655_v39, %v656_v47  ;;  %v889_v62 = vunpack.c.l.b16 %v786_v48  ;;  %v583_v63 = vmul.f32 %v1642_v61, %v529_v50  ;;  %v371_v3 = vpop.f32.mrb[15].mxu0  ;;  %v1693_v11 = vpop.f32.mrb[13].mxu1 }
 0x15b   :  { %v647_v7 = vmax.f32 %v645_v42, %v646_v52  ;;  %v664_v8 = vmax.f32 %v662_v43, %v663_v53  ;;  %v588_v10 = vmul.f32 %v1654_v14, %v534_v56  ;;  %v530_v15 = vmax.f32 %v367_v51, 0.0  ;;  %v1696_v16 = vpop.f32.mrb[14].mxu1 }
 0x15c   :  { %v784_v12 = vpack.c.bf16 %v640_v59, %v640_v59  ;;  %v658_v13 = vrot.slane %v657_v60, 2  ;;  %v528_v49 = vmax.f32 %v1668_v54, 0.0  ;;  %v886_v19 = vunpack.c.l.b16 %v783_v9  ;;  %v1699_v22 = vpop.f32.mrb[15].mxu1 }
 0x15d   :  { %v785_v17 = vpack.c.bf16 %v647_v7, %v647_v7  ;;  %v665_v18 = vrot.slane %v664_v8, 2  ;;  %v690_v20 = vmax.f32 %v1671_v58, %v588_v10  ;;  %v584_v25 = vmul.f32 %v1646_v1, %v530_v15 }
 0x15e   :  { %v887_v23 = vunpack.c.l.b16 %v784_v12  ;;  %v659_v24 = vmax.f32 %v657_v60, %v658_v13  ;;  %v582_v27 = vmul.f32 %v1654_v14, %v528_v49  ;;  %v1704_v54 = vsel %vm908_vm1, %v889_v62, %v886_v19 }
 0x15f   :  { %v888_v28 = vunpack.c.l.b16 %v785_v17  ;;  %v666_v29 = vmax.f32 %v664_v8, %v665_v18  ;;  %v691_v30 = vrot.slane %v690_v20, 4  ;;  %v1706_v32 = vpop.f32.mrb[16].mxu0  ;;  %v532_v35 = vmax.f32 %v369_v57, 0.0 }
 0x160   :  { %v909_v33 = vsel %vm908_vm1, %v887_v23, %v884_v37  ;;  %v660_v34 = vrot.slane %v659_v24, 1  ;;  %v669_v58 = vmax.f32 %v1674_v2, %v582_v27  ;;  %v1710_v38 = vpop.f32.mrb[17].mxu0  ;;  %v543_v43 = vmax.f32 %v1677_v21, 0.0 }
 0x161   :  { %v1713_v39 = vsel %vm908_vm1, %v888_v28, %v885_v41  ;;  %v667_v40 = vrot.slane %v666_v29, 1  ;;  %v692_v42 = vmax.f32 %v690_v20, %v691_v30  ;;  %v1716_v44 = vpop.f32.mrb[18].mxu0  ;;  %v586_v47 = vmul.f32 %v1644_v0, %v532_v35 }
 0x162   :  { %v661_v45 = vmax.f32 %v659_v24, %v660_v34  ;;  %v670_v46 = vrot.slane %v669_v58, 4  ;;  %v533_v37 = vmax.f32 %v371_v3, 0.0  ;;  %v1719_v48 = vpop.f32.mrb[19].mxu0  ;;  %v597_v51 = vmul.f32 %v1650_v6, %v543_v43 }
 0x163   :  { %v668_v2 = vmax.f32 %v666_v29, %v667_v40  ;;  %v693_v50 = vrot.slane %v692_v42, 2  ;;  %v537_v41 = vmax.f32 %v1680_v26, 0.0  ;;  %v676_v55 = vmax.f32 %v583_v63, %v586_v47 }
 0x164   :  { %v787_v52 = vpack.c.bf16 %v661_v45, %v661_v45  ;;  %v671_v53 = vmax.f32 %v669_v58, %v670_v46  ;;  %v587_v21 = vmul.f32 %v1648_v4, %v533_v37  ;;  %v546_v60 = vmax.f32 %v1683_v31, 0.0 }
 0x165   :  { %v788_v56 = vpack.c.bf16 %v668_v2, %v668_v2  ;;  %v694_v57 = vmax.f32 %v692_v42, %v693_v50  ;;  %v591_v59 = vmul.f32 %v1650_v6, %v537_v41  ;;  %v677_v7 = vrot.slane %v676_v55, 4 }
 0x166   :  { %v890_v62 = vunpack.c.l.b16 %v787_v52  ;;  %v672_v3 = vrot.slane %v671_v53, 2  ;;  %v683_v8 = vmax.f32 %v584_v25, %v587_v21  ;;  %v600_v26 = vmul.f32 %v1654_v14, %v546_v60 }
 0x167   :  { %v1726_v9 = vunpack.c.l.b16 %v788_v56  ;;  %v695_v10 = vrot.slane %v694_v57, 1  ;;  %v540_v12 = vmax.f32 %v1686_v36, 0.0  ;;  %v1730_v63 = vpop.f32.mrb[20].mxu0  ;;  %v678_v49 = vmax.f32 %v676_v55, %v677_v7 }
 0x168   :  { %v1733_v13 = vsel %vm910_vm2, %v890_v62, %v909_v33  ;;  %v673_v15 = vmax.f32 %v671_v53, %v672_v3  ;;  %v684_v17 = vrot.slane %v683_v8, 4  ;;  %v1735_v31 = vpop.f32.mrb[21].mxu0  ;;  %v732_v19 = vmax.f32 %v597_v51, %v600_v26 }
 0x169   :  { %v696_v18 = vmax.f32 %v694_v57, %v695_v10  ;;  %v594_v20 = vmul.f32 %v1654_v14, %v540_v12  ;;  %v555_v23 = vmax.f32 %v1690_v5, 0.0  ;;  %v1739_v24 = vpop.f32.mrb[22].mxu0  ;;  %v679_v36 = vrot.slane %v678_v49, 2 }
 0x16a   :  { %v674_v25 = vrot.slane %v673_v15, 1  ;;  %v685_v27 = vmax.f32 %v683_v8, %v684_v17  ;;  %v549_v28 = vmax.f32 %v1693_v11, 0.0  ;;  %v1742_v29 = vpop.f32.mrb[23].mxu0  ;;  %v733_v33 = vrot.slane %v732_v19, 4 }
 0x16b   :  { %v792_v30 = vpack.c.bf16 %v696_v18, %v696_v18  ;;  %v711_v34 = vmax.f32 %v591_v59, %v594_v20  ;;  %v609_v58 = vmul.f32 %v1650_v6, %v555_v23  ;;  %v680_v40 = vmax.f32 %v678_v49, %v679_v36 }
 0x16c   :  { %v675_v35 = vmax.f32 %v673_v15, %v674_v25  ;;  %v686_v42 = vrot.slane %v685_v27, 2  ;;  %v603_v5 = vmul.f32 %v1650_v6, %v549_v28  ;;  %v734_v45 = vmax.f32 %v732_v19, %v733_v33 }
 0x16d   :  { %v895_v43 = vunpack.c.l.b16 %v792_v30  ;;  %v712_v46 = vrot.slane %v711_v34, 4  ;;  %v535_v47 = vmax.f32 %v1706_v32, 0.0  ;;  %v681_v2 = vrot.slane %v680_v40, 1 }
 0x16e   :  { %v789_v37 = vpack.c.bf16 %v675_v35, %v675_v35  ;;  %v687_v11 = vmax.f32 %v685_v27, %v686_v42  ;;  %v558_v50 = vmax.f32 %v1696_v16, 0.0  ;;  %v735_v51 = vrot.slane %v734_v45, 2 }
 0x16f   :  { %v713_v41 = vmax.f32 %v711_v34, %v712_v46  ;;  %v589_v52 = vmul.f32 %v1642_v61, %v535_v47  ;;  %v536_v53 = vmax.f32 %v1710_v38, 0.0  ;;  %v1750_v55 = vpop.f32.mrb[24].mxu0  ;;  %v682_v6 = vmax.f32 %v680_v40, %v681_v2 }
 0x170   :  { %v892_v21 = vunpack.c.l.b16 %v789_v37  ;;  %v688_v56 = vrot.slane %v687_v11, 1  ;;  %v612_v57 = vmul.f32 %v1654_v14, %v558_v50  ;;  %v1753_v59 = vpop.f32.mrb[25].mxu0  ;;  %v736_v32 = vmax.f32 %v734_v45, %v735_v51 }
 0x171   :  { %v714_v60 = vrot.slane %v713_v41, 2  ;;  %v590_v62 = vmul.f32 %v1646_v1, %v536_v53  ;;  %v552_v16 = vmax.f32 %v1699_v22, 0.0  ;;  %v1757_v3 = vpop.f32.mrb[26].mxu0  ;;  %v790_v7 = vpack.c.bf16 %v682_v6, %v682_v6 }
 0x172   :  { %v930_v38 = vsel %vm910_vm2, %v892_v21, %v1704_v54  ;;  %v689_v8 = vmax.f32 %v687_v11, %v688_v56  ;;  %v774_v10 = vmax.f32 %v609_v58, %v612_v57  ;;  %v1761_v26 = vpop.f32.mrb[27].mxu0  ;;  %v737_v12 = vrot.slane %v736_v32, 1 }
 0x173   :  { %v715_v15 = vmax.f32 %v713_v41, %v714_v60  ;;  %v931_v49 = vsel %vm912_vm3, %v895_v43, %v930_v38  ;;  %v606_v17 = vmul.f32 %v1654_v14, %v552_v16  ;;  %v893_v18 = vunpack.c.l.b16 %v790_v7 }
 0x174   :  { %v791_v19 = vpack.c.bf16 %v689_v8, %v689_v8  ;;  %v775_v22 = vrot.slane %v774_v10, 4  ;;  %v538_v20 = vmax.f32 %v1716_v44, 0.0  ;;  %v738_v23 = vmax.f32 %v736_v32, %v737_v12 }
 0x175   :  { %v716_v25 = vrot.slane %v715_v15, 1  ;;  %v753_v54 = vmax.f32 %v603_v5, %v606_v17  ;;  %v539_v36 = vmax.f32 %v1719_v48, 0.0  ;;  %v1769_v27 = vsel %vm912_vm3, %v893_v18, %v1733_v13 }
 0x176   :  { %v1771_v28 = vunpack.c.l.b16 %v791_v19  ;;  %v776_v30 = vmax.f32 %v774_v10, %v775_v22  ;;  %v592_v33 = vmul.f32 %v1644_v0, %v538_v20  ;;  %v798_v14 = vpack.c.bf16 %v738_v23, %v738_v23 }
 0x177   :  { %v717_v34 = vmax.f32 %v715_v15, %v716_v25  ;;  %v754_v58 = vrot.slane %v753_v54, 4  ;;  %v593_v35 = vmul.f32 %v1648_v4, %v539_v36  ;;  %v1775_v44 = vpop.f32.mrb[28].mxu0  ;;  %v541_v48 = vmax.f32 %v1730_v63, 0.0 }
 0x178   :  { %v777_v40 = vrot.slane %v776_v30, 2  ;;  %v697_v42 = vmax.f32 %v589_v52, %v592_v33  ;;  %v542_v5 = vmax.f32 %v1735_v31, 0.0  ;;  %v1779_v13 = vpop.f32.mrb[29].mxu0  ;;  %v1781_v43 = vunpack.c.l.b16 %v798_v14 }
 0x179   :  { %v795_v45 = vpack.c.bf16 %v717_v34, %v717_v34  ;;  %v755_v46 = vmax.f32 %v753_v54, %v754_v58  ;;  %v704_v47 = vmax.f32 %v590_v62, %v593_v35  ;;  %v1783_v37 = vpop.f32.mrb[30].mxu0  ;;  %v595_v50 = vmul.f32 %v1642_v61, %v541_v48 }
 0x17a   :  { %v778_v2 = vmax.f32 %v776_v30, %v777_v40  ;;  %v698_v11 = vrot.slane %v697_v42, 4  ;;  %v596_v51 = vmul.f32 %v1646_v1, %v542_v5  ;;  %v1787_v41 = vpop.f32.mrb[31].mxu0  ;;  %v544_v53 = vmax.f32 %v1739_v24, 0.0 }
 0x17b   :  { %v898_v63 = vunpack.c.l.b16 %v795_v45  ;;  %v756_v52 = vrot.slane %v755_v46, 2  ;;  %v705_v31 = vrot.slane %v704_v47, 4  ;;  %v545_v56 = vmax.f32 %v1742_v29, 0.0 }
 0x17c   :  { %v779_v21 = vrot.slane %v778_v2, 1  ;;  %v699_v6 = vmax.f32 %v697_v42, %v698_v11  ;;  %v547_v57 = vmax.f32 %v1750_v55, 0.0  ;;  %v598_v16 = vmul.f32 %v1644_v0, %v544_v53 }
 0x17d   :  { %v1793_v32 = vsel %vm914_vm4, %v898_v63, %v931_v49  ;;  %v757_v60 = vmax.f32 %v755_v46, %v756_v52  ;;  %v706_v62 = vmax.f32 %v704_v47, %v705_v31  ;;  %v599_v8 = vmul.f32 %v1648_v4, %v545_v56 }
 0x17e   :  { %v780_v38 = vmax.f32 %v778_v2, %v779_v21  ;;  %v700_v7 = vrot.slane %v699_v6, 2  ;;  %v601_v10 = vmul.f32 %v1642_v61, %v547_v57  ;;  %v718_v15 = vmax.f32 %v595_v50, %v598_v16 }
 0x17f   :  { %v758_v24 = vrot.slane %v757_v60, 1  ;;  %v707_v12 = vrot.slane %v706_v62, 2  ;;  %v548_v29 = vmax.f32 %v1753_v59, 0.0  ;;  %v725_v49 = vmax.f32 %v596_v51, %v599_v8 }
 0x180   :  { %v804_v17 = vpack.c.bf16 %v780_v38, %v780_v38  ;;  %v701_v55 = vmax.f32 %v699_v6, %v700_v7  ;;  %v550_v18 = vmax.f32 %v1757_v3, 0.0  ;;  %v719_v20 = vrot.slane %v718_v15, 4 }
 0x181   :  { %v759_v19 = vmax.f32 %v757_v60, %v758_v24  ;;  %v708_v22 = vmax.f32 %v706_v62, %v707_v12  ;;  %v602_v23 = vmul.f32 %v1646_v1, %v548_v29  ;;  %v726_v36 = vrot.slane %v725_v49, 4 }
 0x182   :  { %v907_v25 = vunpack.c.l.b16 %v804_v17  ;;  %v702_v54 = vrot.slane %v701_v55, 1  ;;  %v604_v30 = vmul.f32 %v1644_v0, %v550_v18  ;;  %v720_v14 = vmax.f32 %v718_v15, %v719_v20 }
 0x183   :  { %v801_v33 = vpack.c.bf16 %v759_v19, %v759_v19  ;;  %v709_v59 = vrot.slane %v708_v22, 1  ;;  %v551_v34 = vmax.f32 %v1761_v26, 0.0  ;;  %v727_v35 = vmax.f32 %v725_v49, %v726_v36 }
 0x184   :  { %v703_v58 = vmax.f32 %v701_v55, %v702_v54  ;;  %v739_v3 = vmax.f32 %v601_v10, %v604_v30  ;;  %v553_v40 = vmax.f32 %v1775_v44, 0.0  ;;  %v721_v5 = vrot.slane %v720_v14, 2 }
 0x185   :  { %v904_v42 = vunpack.c.l.b16 %v801_v33  ;;  %v710_v48 = vmax.f32 %v708_v22, %v709_v59  ;;  %v605_v45 = vmul.f32 %v1648_v4, %v551_v34  ;;  %v728_v47 = vrot.slane %v727_v35, 2 }
 0x186   :  { %v793_v46 = vpack.c.bf16 %v703_v58, %v703_v58  ;;  %v740_v2 = vrot.slane %v739_v3, 4  ;;  %v607_v11 = vmul.f32 %v1642_v61, %v553_v40  ;;  %v722_v51 = vmax.f32 %v720_v14, %v721_v5 }
 0x187   :  { %v794_v50 = vpack.c.bf16 %v710_v48, %v710_v48  ;;  %v746_v63 = vmax.f32 %v602_v23, %v605_v45  ;;  %v554_v26 = vmax.f32 %v1779_v13, 0.0  ;;  %v729_v31 = vmax.f32 %v727_v35, %v728_v47 }
 0x188   :  { %v896_v52 = vunpack.c.l.b16 %v793_v46  ;;  %v741_v53 = vmax.f32 %v739_v3, %v740_v2  ;;  %v556_v44 = vmax.f32 %v1783_v37, 0.0  ;;  %v723_v6 = vrot.slane %v722_v51, 1 }
 0x189   :  { %v897_v21 = vunpack.c.l.b16 %v794_v50  ;;  %v747_v56 = vrot.slane %v746_v63, 4  ;;  %v608_v57 = vmul.f32 %v1646_v1, %v554_v26  ;;  %v730_v62 = vrot.slane %v729_v31, 1 }
 0x18a   :  { %v915_v60 = vsel %vm914_vm4, %v896_v52, %v1769_v27  ;;  %v742_v61 = vrot.slane %v741_v53, 2  ;;  %v610_v16 = vmul.f32 %v1644_v0, %v556_v44  ;;  %v724_v38 = vmax.f32 %v722_v51, %v723_v6 }
 0x18b   :  { %v748_v7 = vmax.f32 %v746_v63, %v747_v56  ;;  %v557_v13 = vmax.f32 %v1787_v41, 0.0  ;;  %v933_v37 = vsel %vm916_vm5, %v1781_v43, %v1793_v32  ;;  %v731_v8 = vmax.f32 %v729_v31, %v730_v62  ;;  %v1216_v56 = vld [vmem:[%s1850_s4] ss:$0 sm:$0xff] }
 0x18c   :  { %v743_v10 = vmax.f32 %v741_v53, %v742_v61  ;;  %v760_v24 = vmax.f32 %v607_v11, %v610_v16  ;;  %v934_v1 = vsel %vm918_vm6, %v904_v42, %v933_v37  ;;  %v796_v12 = vpack.c.bf16 %v724_v38, %v724_v38 }
 0x18d   :  { %v749_v15 = vrot.slane %v748_v7, 2  ;;  %v611_v27 = vmul.f32 %v1648_v4, %v557_v13  ;;  %v935_v29 = vsel %vm920_vm7, %v907_v25, %v934_v1  ;;  %v797_v0 = vpack.c.bf16 %v731_v8, %v731_v8 }
 0x18e   :  { %v744_v17 = vrot.slane %v743_v10, 1  ;;  %v761_v55 = vrot.slane %v760_v24, 4  ;;  %v938_v49 = vpack.c.b16 %v935_v29, %v935_v29  ;;  %v899_v41 = vunpack.c.l.b16 %v796_v12 }
 0x18f   :  { %v750_v18 = vmax.f32 %v748_v7, %v749_v15  ;;  %v767_v19 = vmax.f32 %v608_v57, %v611_v27  ;;  %v923_v43 = vsel %vm910_vm2, %v1726_v9, %v1713_v39  ;;  %v900_v32 = vunpack.c.l.b16 %v797_v0 }
 0x190   :  { %v745_v22 = vmax.f32 %v743_v10, %v744_v17  ;;  %v762_v20 = vmax.f32 %v760_v24, %v761_v55  ;;  %1337 = vmatmul.mubr.bf16.vlgmr.msra.gmra.mrb[32].mxu0 %v938_v49  ;;  %v924_v4 = vsel %vm912_vm3, %v1771_v28, %v923_v43  ;;  %v917_v23 = vsel %vm916_vm5, %v899_v41, %v915_v60 }
 0x191   :  { %v751_v25 = vrot.slane %v750_v18, 1  ;;  %v768_v54 = vrot.slane %v767_v19, 4  ;;  %v925_v36 = vsel %vm914_vm4, %v897_v21, %v924_v4 }
 0x192   :  { %v799_v30 = vpack.c.bf16 %v745_v22, %v745_v22  ;;  %v763_v33 = vrot.slane %v762_v20, 2  ;;  %v926_v59 = vsel %vm916_vm5, %v900_v32, %v925_v36 }
 0x193   :  { %v752_v14 = vmax.f32 %v750_v18, %v751_v25  ;;  %v769_v34 = vmax.f32 %v767_v19, %v768_v54 }
 0x194   :  { %v902_v39 = vunpack.c.l.b16 %v799_v30  ;;  %v764_v9 = vmax.f32 %v762_v20, %v763_v33 }
 0x195   :  { %v800_v58 = vpack.c.bf16 %v752_v14, %v752_v14  ;;  %v770_v35 = vrot.slane %v769_v34, 2 }
 0x196   :  { %v765_v3 = vrot.slane %v764_v9, 1  ;;  %v919_v40 = vsel %vm918_vm6, %v902_v39, %v917_v23 }
 0x197   :  { %v771_v28 = vmax.f32 %v769_v34, %v770_v35  ;;  %v903_v42 = vunpack.c.l.b16 %v800_v58 }
 0x198   :  { %v766_v48 = vmax.f32 %v764_v9, %v765_v3 }
 0x199   :  { %v772_v5 = vrot.slane %v771_v28, 1  ;;  %v927_v45 = vsel %vm918_vm6, %v903_v42, %v926_v59 }
 0x19a   :  { %v802_v46 = vpack.c.bf16 %v766_v48, %v766_v48 }
 0x19b   :  { %v773_v47 = vmax.f32 %v771_v28, %v772_v5 }
 0x19c   :  { %v905_v2 = vunpack.c.l.b16 %v802_v46 }
 0x19d   :  { %v803_v11 = vpack.c.bf16 %v773_v47, %v773_v47 }
 0x19e   :  { %v921_v50 = vsel %vm920_vm7, %v905_v2, %v919_v40 }
 0x19f   :  { %v906_v51 = vunpack.c.l.b16 %v803_v11  ;;  %v936_v52 = vpack.c.b16 %v921_v50, %v921_v50 }
 0x1a1   :  { %v928_v63 = vsel %vm920_vm7, %v906_v51, %v927_v45 }
 0x1a2   :  { %v937_v26 = vpack.c.b16 %v928_v63, %v928_v63 }
 0x1a4   :  { %1118 = vmatprep.mubr.bf16.mxu1 %v937_v26 }
 0x1a5   :  { %1119 = vmatmul.mubr.bf16.vlgmr.msra.gmra.mrb[16].mxu1 %v936_v52 }
 0x263   :  { %v1160_v31 = vpop.f32.mrb[32].mxu0 }
 0x264   :  { %v1338_v53 = vpop.f32.mrb[33].mxu0 }
 0x265   :  { %v1163_v44 = vpop.f32.mrb[34].mxu0 }
 0x266   :  { %v1339_v21 = vpop.f32.mrb[35].mxu0 }
 0x278   :  { %v1273_v6 = vpop.f32.mrb[16].mxu1 }
 0x279   :  { %v1274_v57 = vpop.f32.mrb[17].mxu1 }
 0x27a   :  { %v1275_v60 = vadd.f32 %v1274_v57, %v1273_v6  ;;  %v1276_v62 = vpop.f32.mrb[18].mxu1 }
 0x27b   :  { %v1277_v61 = vpop.f32.mrb[19].mxu1 }
 0x27c   :  { %v1121_v16 = vadd.f32 %v1275_v60, %v1216_v56 }
 0x27e   :  { %v1161_v38 = vadd.f32 %v1160_v31, %v1121_v16 }
 0x280   :  { %1166 = vst [vmem:[#allocation10] sm:$0xff] %v1161_v38 }
 0x281   :  { %1517 = shalt.err (!%p1514_p8)
}
 0x282   :  { %s1518_s4 = scalar_lea.hbm %s1851_s5, 128 }
 0x283   :  { %p1519_p9 = scmp.ne.s32.totalorder %s1851_s5, %s1518_s4  ;;  %p1522_p10 = scmp.lt.u32.totalorder %s1518_s4, %s1851_s5 }
 0x285   :  { %p1524_p11 = pnand %p1522_p10, %p1519_p9 }
 0x287   :  { %1527 = shalt.err (!%p1524_p11)
}
 0x288   :  { %1176 = dma.vmem_to_hbm [thread:$0]  %s1174_s20, 128, %s1851_s5, [#allocation4]  }
 0x289   :  { %1534 = dma.done.wait [#allocation4], 128  }
 0x28a   :  { %1535 = vsyncadd [#allocation4], 4294967168 }
 0x28b   :  { %1180 = vsyncpa [#allocation3], 1 }
 0x28c   :  { %1181 = vsyncpa [#allocation6], 1 }
 0x28d   :  { %1182 = vsyncpa [#allocation9], 1 }
 0x28e   :  { %1183 = vsyncpa [#allocation4], 1 }

</bundles_post_ra>
